<compile_context>
chip_gen: v6e
topology: v6e:2x2x1
jax: 0.10.0
libtpu: 0.0.40
codegen_flags: <defaults>
</compile_context>

<pallas_src>
import functools

import jax
import jax.numpy as jnp
from jax.experimental import pallas as pl
from jax.experimental.pallas import tpu as pltpu

_LANES = 128
_MAX_BLOCK_ROWS = 2048       # (2048, 128) f32 block = 1 MiB per buffer
_SINGLE_BLOCK_ROWS = 256     # grid=(1,) only for truly tiny inputs


def _ceil_div(a, b):
    return -(-a // b)


def _sublane_multiple(dtype):
    itemsize = jnp.dtype(dtype).itemsize
    if itemsize >= 4:
        return 8
    if itemsize == 2:
        return 16
    return 32


def _static_int_pow(x, order):
    """x ** order for a static python int order >= 1, via square-and-multiply."""
    result = None
    base = x
    e = int(order)
    while e > 0:
        if e & 1:
            result = base if result is None else result * base
        e >>= 1
        if e:
            base = base * base
    return result


def _cutoff_body(x_f32, inv_cutoff_f32, *, order, eps, approx):
    u = x_f32 * inv_cutoff_f32                              # multiply, not divide
    p = _static_int_pow(u, order)                           # (d / cutoff) ** order
    denom = jnp.maximum(1.0 - p, jnp.float32(eps))          # clamp(min=eps)
    inv = pl.reciprocal(denom, approx=approx)               # EUP when approx=True
    return jnp.exp(1.0 - inv)


def _cutoff_kernel_static(d_ref, out_ref, *, inv_cutoff, order, eps, approx):
    x = d_ref[...].astype(jnp.float32)
    y = _cutoff_body(x, jnp.float32(inv_cutoff), order=order, eps=eps, approx=approx)
    out_ref[...] = y.astype(out_ref.dtype)


def _cutoff_kernel_prefetch(inv_cutoff_ref, d_ref, out_ref, *, order, eps, approx):
    x = d_ref[...].astype(jnp.float32)
    y = _cutoff_body(x, inv_cutoff_ref[0], order=order, eps=eps, approx=approx)
    out_ref[...] = y.astype(out_ref.dtype)


def cutoff_smooth(distances, cutoff, *, order=2, eps=1e-10):
    """JAX/Pallas equivalent of CutoffSmooth(order, eps).forward(distances, cutoff)."""
    if int(order) < 1:
        raise ValueError("order must be a positive integer")
    distances = jnp.asarray(distances)
    orig_shape = distances.shape
    dtype = distances.dtype

    flat = distances.reshape(-1)
    n = flat.shape[0]
    if n == 0:  # empty-input guard (zero-sized block would be degenerate)
        return jnp.zeros(orig_shape, dtype)

    # Lane alignment only: pad to a multiple of 128 when needed.  Row raggedness
    # is handled by Pallas's masked boundary blocks, so no row padding at all.
    n_pad = _ceil_div(n, _LANES) * _LANES
    needs_pad = n_pad != n
    if needs_pad:
        # TODO(synk): in production accept a pre-flattened, 128-aligned buffer so
        # this pad (and the post-slice) add no extra HBM round trips.
        flat = jnp.pad(flat, (0, n_pad - n))   # zeros are safe: exp(0) = 1, sliced off
    rows = n_pad // _LANES
    slab = flat.reshape(rows, _LANES)

    # ---- block / grid selection ---------------------------------------------
    sub = _sublane_multiple(dtype)
    if rows <= _SINGLE_BLOCK_ROWS:
        # Tiny input: one full-array block (exempt from (8,128) divisibility).
        block_rows = rows
        grid_n = 1
    else:
        # >= 4 balanced steps so each of v7x's 2 TCs gets >= 2 pipelined steps;
        # cap block at 2048 rows (1 MiB f32 per buffer), round to sublane multiple.
        target = _ceil_div(rows, 4)
        block_rows = max(sub, min(_MAX_BLOCK_ROWS, _ceil_div(target, sub) * sub))
        grid_n = _ceil_div(rows, block_rows)   # last block may be ragged (masked)

    itemsize = jnp.dtype(dtype).itemsize
    # bf16 / fp8 I/O: approx-reciprocal error (~2^-12 in the exponent) is below
    # the output rounding, and it frees VALU slots on the high-bandwidth v7x
    # bf16 path.  f32 I/O keeps the exact reciprocal (ulp fidelity near d~cutoff).
    approx_recip = itemsize < 4

    elems = rows * _LANES
    cost = pl.CostEstimate(
        flops=10 * elems,
        transcendentals=elems,
        bytes_accessed=2 * elems * itemsize,
    )
    cparams = pltpu.CompilerParams(dimension_semantics=("parallel",))
    out_shape = jax.ShapeDtypeStruct((rows, _LANES), dtype)

    if isinstance(cutoff, (int, float)):
        # Static cutoff: bake 1/cutoff into the kernel, no SMEM prefetch DMA.
        kernel = functools.partial(
            _cutoff_kernel_static,
            inv_cutoff=1.0 / float(cutoff),
            order=int(order), eps=float(eps), approx=approx_recip,
        )
        out = pl.pallas_call(
            kernel,
            out_shape=out_shape,
            grid=(grid_n,),
            in_specs=[pl.BlockSpec((block_rows, _LANES), lambda i: (i, 0))],
            out_specs=pl.BlockSpec((block_rows, _LANES), lambda i: (i, 0)),
            compiler_params=cparams,
            cost_estimate=cost,
        )(slab)
    else:
        # Traced cutoff: prefetch 1/cutoff (f32) into SMEM.
        inv_cutoff = (1.0 / jnp.asarray(cutoff, dtype=jnp.float32)).reshape(1)
        kernel = functools.partial(
            _cutoff_kernel_prefetch,
            order=int(order), eps=float(eps), approx=approx_recip,
        )
        out = pl.pallas_call(
            kernel,
            out_shape=out_shape,
            grid_spec=pltpu.PrefetchScalarGridSpec(
                num_scalar_prefetch=1,
                grid=(grid_n,),
                in_specs=[pl.BlockSpec((block_rows, _LANES), lambda i, inv_c: (i, 0))],
                out_specs=pl.BlockSpec((block_rows, _LANES), lambda i, inv_c: (i, 0)),
            ),
            compiler_params=cparams,
            cost_estimate=cost,
        )(inv_cutoff, slab)

    flat_out = out.reshape(-1)
    if needs_pad:
        flat_out = flat_out[:n]
    return flat_out.reshape(orig_shape)


def cutoff_smooth_ref(distances, cutoff, *, order=2, eps=1e-10):
    """Pure-JAX reference, faithful to the PyTorch module (true divide by cutoff)."""
    distances = jnp.asarray(distances)
    d = distances.astype(jnp.float32)
    e = 1.0 - 1.0 / jnp.maximum(
        1.0 - (d / jnp.float32(cutoff)) ** int(order), jnp.float32(eps)
    )
    return jnp.exp(e).astype(distances.dtype)


if __name__ == "__main__":
    key = jax.random.PRNGKey(0)
    cutoff = 5.2

    # Tolerance note (f32 path): kernel multiplies by a precomputed 1/cutoff
    # while the reference truly divides; the resulting ~1.5-ulp difference in
    # d/cutoff is amplified by the function's condition number 2u/(1-u^2)^2.
    # For outputs >= 1e-6 the relative disagreement stays < 1e-4; atol covers
    # the underflowed tail near u -> 1.
    RTOL, ATOL = 5e-3, 1e-6

    # 1) Small f32 input, static cutoff: single-block path, no padding (rows=16).
    shape = (2, 4, 16, 16)
    d_small = jax.random.uniform(
        key, shape, dtype=jnp.float32, minval=0.0, maxval=cutoff * 0.999
    )
    out = jax.block_until_ready(cutoff_smooth(d_small, cutoff, order=2, eps=1e-10))
    ref = cutoff_smooth_ref(d_small, cutoff, order=2, eps=1e-10)
    assert out.shape == shape and out.dtype == d_small.dtype
    assert jnp.allclose(out, ref, rtol=RTOL, atol=ATOL), "mismatch (small / static cutoff)"

    # 2) Traced-cutoff (scalar-prefetch) path on the same data.
    out_t = jax.block_until_ready(
        cutoff_smooth(d_small, jnp.float32(cutoff), order=2, eps=1e-10)
    )
    assert jnp.allclose(out_t, ref, rtol=RTOL, atol=ATOL), "mismatch (traced cutoff)"

    # 3) Boundary / clamp path: d == 0 -> 1, d == cutoff and d > cutoff -> ~0.
    #    Also exercises the n % 128 != 0 pad/slice fallback.
    edge = jnp.asarray([0.0, 0.5 * cutoff, cutoff, 1.5 * cutoff], jnp.float32).reshape(1, 4)
    out_e = jax.block_until_ready(cutoff_smooth(edge, cutoff, order=2, eps=1e-10))
    ref_e = cutoff_smooth_ref(edge, cutoff, order=2, eps=1e-10)
    assert jnp.allclose(out_e, ref_e, rtol=RTOL, atol=ATOL), "mismatch (edge values)"

    # 4) bf16 I/O path (f32 math inside, approx reciprocal, 16-row sublane align).
    d_bf16 = jax.random.uniform(
        jax.random.PRNGKey(2), (4, 8, 32), dtype=jnp.float32,
        minval=0.0, maxval=cutoff * 0.9,
    ).astype(jnp.bfloat16)
    out_h = jax.block_until_ready(cutoff_smooth(d_bf16, cutoff, order=2, eps=1e-10))
    ref_h = cutoff_smooth_ref(d_bf16, cutoff, order=2, eps=1e-10)
    assert out_h.dtype == jnp.bfloat16
    assert jnp.allclose(out_h.astype(jnp.float32), ref_h.astype(jnp.float32),
                        rtol=3e-2, atol=1e-2), "mismatch (bf16)"

    # 5) Larger f32 input: multi-block path with a ragged last block
    #    (rows=1700 -> block_rows=432 -> grid=(4,), last block masked).
    big_shape = (2, 5, 128, 170)
    d_big = jax.random.uniform(
        jax.random.PRNGKey(1), big_shape, dtype=jnp.float32,
        minval=0.0, maxval=cutoff * 0.999,
    )
    out_b = jax.block_until_ready(cutoff_smooth(d_big, cutoff, order=2, eps=1e-10))
    ref_b = cutoff_smooth_ref(d_big, cutoff, order=2, eps=1e-10)
    assert out_b.shape == big_shape
    assert jnp.allclose(out_b, ref_b, rtol=RTOL, atol=ATOL), "mismatch (big / ragged)"

    # 6) Empty-input guard.
    empty = jnp.zeros((0, 3), jnp.float32)
    out_0 = jax.block_until_ready(cutoff_smooth(empty, cutoff))
    assert out_0.shape == (0, 3)

    print("KERNEL_OK")
</pallas_src>

<mosaic_0001>
module attributes {stable_mosaic.version = 11 : i64} {
  func.func @_cutoff_kernel_static(%arg0: i32, %arg1: memref<16x128xf32, #tpu.memory_space<vmem>>, %arg2: memref<16x128xf32, #tpu.memory_space<vmem>>) attributes {dimension_semantics = [#tpu.dimension_semantics<parallel>], iteration_bounds = array<i64: 1>, scalar_prefetch = 0 : i64, scratch_operands = 0 : i64, tpu.core_type = #tpu.core_type<tc>, window_params = [{transform_indices = @transform_0, window_bounds = array<i64: 16, 128>}, {transform_indices = @transform_1, window_bounds = array<i64: 16, 128>}]} {
    %c0 = arith.constant 0 : index
    %c0_0 = arith.constant 0 : index
    %0 = vector.load %arg1[%c0, %c0_0] : memref<16x128xf32, #tpu.memory_space<vmem>>, vector<16x128xf32>
    %cst = arith.constant 0.192307696 : f32
    %1 = vector.broadcast %cst : f32 to vector<16x128xf32>
    %2 = arith.mulf %0, %1 : vector<16x128xf32>
    %3 = arith.mulf %2, %2 : vector<16x128xf32>
    %cst_1 = arith.constant 1.000000e+00 : f32
    %4 = vector.broadcast %cst_1 : f32 to vector<16x128xf32>
    %5 = arith.subf %4, %3 : vector<16x128xf32>
    %cst_2 = arith.constant 1.000000e-10 : f32
    %6 = vector.broadcast %cst_2 : f32 to vector<16x128xf32>
    %7 = arith.maximumf %5, %6 : vector<16x128xf32>
    %8 = tpu.reciprocal %7 : vector<16x128xf32> -> vector<16x128xf32>
    %cst_3 = arith.constant 1.000000e+00 : f32
    %9 = vector.broadcast %cst_3 : f32 to vector<16x128xf32>
    %10 = arith.subf %9, %8 : vector<16x128xf32>
    %11 = math.exp %10 : vector<16x128xf32>
    %c0_4 = arith.constant 0 : index
    %c0_5 = arith.constant 0 : index
    %12 = vector.load %arg2[%c0_4, %c0_5] : memref<16x128xf32, #tpu.memory_space<vmem>>, vector<16x128xf32>
    tpu.vector_store %arg2[%c0_4, %c0_5], %11 {strides = array<i32>} : memref<16x128xf32, #tpu.memory_space<vmem>>, vector<16x128xf32>,
    return
  }
  func.func @transform_0(%arg0: i32) -> (i32, i32) {
    %c0_i32 = arith.constant 0 : i32
    %c0_i32_0 = arith.constant 0 : i32
    return %arg0, %c0_i32 : i32, i32
  }
  func.func @transform_1(%arg0: i32) -> (i32, i32) {
    %c0_i32 = arith.constant 0 : i32
    %c0_i32_0 = arith.constant 0 : i32
    return %arg0, %c0_i32 : i32, i32
  }
}

</mosaic_0001>

<bundles_post_ra>
// kernel: tpu_custom_call.1
= control target key start
LH: loop header
LB: loop body
LE: loop exit
PB: predicated region body
PF: predicated region fallthrough
CT: control target
= control target key end

     0   :  { %6 = vsyncpa [#allocation3], 0  ;;  %s142_s0 = inlined_call_operand.hbm [shape: f32[16,128], index: 0, kind: input, shape index: {}]   ;;  %s143_s1 = inlined_call_operand.hbm [shape: f32[16,128], index: 1, kind: output, shape index: {}]  }
   0x1   :  { %7 = vsyncpa [#allocation4], 0  ;;  %s116_s6 = smov [#allocation2]  }
   0x2   :  { %s13_s7 = sshll.u32 %s116_s6, 4  ;;  %s14_s7 = int_to_ptr.vmem [resolvable:$true] %s13_s7 }
   0x3   :  { %s80_s8 = scalar_lea.vmem %s14_s7, 256  ;;  %p85_p1 = scmp.lt.s32.totalorder %s14_s7, %s14_s7 }
   0x4   :  { %p81_p0 = scmp.ne.s32.totalorder %s14_s7, %s80_s8  ;;  %p86_p2 = scmp.lt.s32.totalorder %s80_s8, %s80_s8 }
   0x6   :  { %p87_p3 = por %p86_p2, %p85_p1 }
   0x8   :  { %p88_p4 = pnand %p87_p3, %p81_p0 }
   0xa   :  { %91 = shalt.err (!%p88_p4)
}
   0xb   :  { %s117_s9 = smov 128   ;;  %s118_s10 = smov 8  }
   0xc   :  { %19 = dma.hbm_to_vmem [thread:$0]  %s142_s0, 256, %s14_s7, [#allocation3], %s117_s9, %s117_s9, %s118_s10  }
   0xd   :  { %112 = dma.done.wait [#allocation3], 256  }
   0xe   :  { %113 = vsyncadd [#allocation3], 4294967040  ;;  %v23_v0 = vld [vmem:[#allocation2] sm:$0xff]  ;;  %v24_v1 = vld [vmem:[#allocation2 + $0x8] sm:$0xff]  ;;  %s119_s0 = smov [#allocation5]  }
   0xf   :  { %v25_v2 = vmul.f32 0.1923077, %v23_v0  ;;  %v26_v3 = vmul.f32 0.1923077, %v24_v1  ;;  %s48_s13 = sshll.u32 %s119_s0, 4  ;;  %s49_s13 = int_to_ptr.vmem [resolvable:$true] %s48_s13 }
  0x10   :  { %s92_s14 = scalar_lea.vmem %s49_s13, 256  ;;  %p97_p6 = scmp.lt.s32.totalorder %s49_s13, %s49_s13 }
  0x11   :  { %v27_v4 = vmul.f32 %v25_v2, %v25_v2  ;;  %v28_v5 = vmul.f32 %v26_v3, %v26_v3  ;;  %p93_p5 = scmp.ne.s32.totalorder %s49_s13, %s92_s14  ;;  %p98_p7 = scmp.lt.s32.totalorder %s92_s14, %s92_s14 }
  0x13   :  { %v29_v6 = vsub.f32 1.0, %v27_v4  ;;  %v30_v7 = vsub.f32 1.0, %v28_v5  ;;  %p99_p8 = por %p98_p7, %p97_p6 }
  0x15   :  { %v31_v8 = vmax.f32 %v29_v6, 1e-10  ;;  %v32_v9 = vmax.f32 %v30_v7, 1e-10  ;;  %p100_p9 = pnand %p99_p8, %p93_p5 }
  0x17   :  { %64 = vrcp.f32 %v31_v8 }
  0x18   :  { %66 = vrcp.f32 %v32_v9 }
  0x24   :  { %v65_v10 = vpop.eup %64 }
  0x25   :  { %v67_v11 = vpop.eup %66  ;;  %v35_v12 = vsub.f32 1.0, %v65_v10 }
  0x26   :  { %v36_v13 = vsub.f32 1.0, %v67_v11 }
  0x27   :  { %v37_v14 = vmul.f32 1.442695, %v35_v12 }
  0x28   :  { %v39_v15 = vmul.f32 1.442695, %v36_v13 }
  0x29   :  { %68 = vpow2.f32 %v37_v14 }
  0x2a   :  { %70 = vpow2.f32 %v39_v15 }
  0x36   :  { %v69_v16 = vpop.eup %68 }
  0x37   :  { %v71_v17 = vpop.eup %70  ;;  %41 = vst [vmem:[#allocation5] sm:$0xff] %v69_v16 }
  0x38   :  { %42 = vst [vmem:[#allocation5 + $0x8] sm:$0xff] %v71_v17 }
  0x39   :  { %103 = shalt.err (!%p100_p9)
}
  0x3a   :  { %54 = dma.vmem_to_hbm [thread:$0]  %s49_s13, 256, %s143_s1, [#allocation4], %s117_s9, %s117_s9, %s118_s10  }
  0x3b   :  { %114 = dma.done.wait [#allocation4], 256  }
  0x3c   :  { %115 = vsyncadd [#allocation4], 4294967040 }
  0x3d   :  { %58 = vsyncpa [#allocation3], 1 }
  0x3e   :  { %59 = vsyncpa [#allocation4], 1 }

</bundles_post_ra>
